<compile_context>
chip_gen: v7x
topology: tpu7x:2x2x1
jax: 0.10.0
libtpu: 0.0.40
codegen_flags: <defaults>
</compile_context>

<pallas_src>
import jax
import jax.numpy as jnp
from jax.experimental import pallas as pl
from jax.experimental.pallas import tpu as pltpu

_SMALL_K_FMA_THRESHOLD = 8  # contractions with d_in below this run on the VPU


def _round_up(n, m):
    return ((n + m - 1) // m) * m


def _make_dnn_gaaf_kernel(n_layers):
    """Kernel: n_layers LAAF layers (tanh(10*a[i]*(W@h+b))) + final Linear.

    All arrays are in the transposed (feature-major, batch-on-lanes) layout.
    """

    def kernel(scale_ref, x_ref, *refs):
        # refs = (w0, b0, w1, b1, ..., w_{n_layers}, b_{n_layers}, out_ref)
        out_ref = refs[-1]
        wb = refs[:-1]

        h = x_ref[...].astype(jnp.float32)  # (x_dim, block_b)

        for i in range(n_layers):
            w = wb[2 * i][...].astype(jnp.float32)      # (d_out, d_in)
            b = wb[2 * i + 1][...].astype(jnp.float32)  # (d_out, 1)
            d_in = w.shape[1]
            if d_in <= _SMALL_K_FMA_THRESHOLD:
                # Tiny K: broadcast FMAs on the VPU, skip the MXU pass.
                z = w[:, 0:1] * h[0:1, :] + b
                for k in range(1, d_in):
                    z = z + w[:, k:k + 1] * h[k:k + 1, :]
            else:
                z = jnp.dot(w, h, preferred_element_type=jnp.float32) + b
            # scale_ref holds 10 * a (precomputed host-side); tanh goes to EUP.
            h = jnp.tanh(scale_ref[i] * z)

        # Final plain Linear layer (no activation, no scaling).
        w = wb[2 * n_layers][...].astype(jnp.float32)
        b = wb[2 * n_layers + 1][...].astype(jnp.float32)
        out = jnp.dot(w, h, preferred_element_type=jnp.float32) + b
        out_ref[...] = out.astype(out_ref.dtype)

    return kernel


def dnn_gaaf_forward(x, a, weights, biases, *, block_b=256):
    """Pallas forward pass (matches PyTorch DNN_GAAF semantics).

    x:       (batch, x_dim) float32
    a:       (n_layers, 1)  float32  -- per-layer adaptive activation scalar
    weights: list of (dim_in, dim_out) arrays, len == n_layers + 1
    biases:  list of (1, dim_out)   arrays,   len == n_layers + 1
    """
    B, x_dim = x.shape
    n_layers = a.shape[0]
    assert len(weights) == n_layers + 1 and len(biases) == n_layers + 1
    u_dim = weights[-1].shape[1]

    # Pick a lane-aligned batch tile; pad the batch if it does not divide.
    if B < block_b:
        block_b = B if B <= 128 else _round_up(B, 128)
    B_pad = _round_up(B, block_b)
    if B_pad != B:
        x = jnp.pad(x, ((0, B_pad - B), (0, 0)))

    # Lane-dense transposed layout: batch on the lane axis.
    xT = x.T                                                   # (x_dim, B_pad)
    scales = (10.0 * a).reshape(n_layers).astype(jnp.float32)  # SMEM scalars

    in_specs = [
        # per-layer scales live in SMEM (read element-wise as scalars)
        pl.BlockSpec(memory_space=pltpu.MemorySpace.SMEM),
        # batch-tiled transposed input
        pl.BlockSpec((x_dim, block_b), lambda i: (0, i)),
    ]
    flat_params = []
    for w, b in zip(weights, biases):
        wT = jnp.asarray(w).T                # (d_out, d_in) -- PyTorch-native order
        bT = jnp.asarray(b).reshape(-1, 1)   # (d_out, 1)    -- broadcasts over lanes
        in_specs.append(pl.BlockSpec(wT.shape, lambda i: (0, 0)))
        in_specs.append(pl.BlockSpec(bT.shape, lambda i: (0, 0)))
        flat_params.extend([wT, bT])

    out_spec = pl.BlockSpec((u_dim, block_b), lambda i: (0, i))

    outT = pl.pallas_call(
        _make_dnn_gaaf_kernel(n_layers),
        out_shape=jax.ShapeDtypeStruct((u_dim, B_pad), x.dtype),
        grid=(B_pad // block_b,),
        in_specs=in_specs,
        out_specs=out_spec,
        compiler_params=pltpu.CompilerParams(dimension_semantics=("parallel",)),
    )(scales, xT, *flat_params)

    out = outT.T  # back to (batch, u_dim); tiny wrapper-side transpose
    return out[:B] if B_pad != B else out


def dnn_gaaf_reference(x, a, weights, biases):
    """Pure-JAX reference implementing the PyTorch semantics."""
    h = x
    n_layers = a.shape[0]
    for i in range(n_layers):
        z = h @ weights[i] + biases[i]
        h = jnp.tanh(10.0 * a[i, 0] * z)
    return h @ weights[-1] + biases[-1]


def init_params(key, n_layers, n_hidden, x_dim, u_dim):
    """Deterministic synthetic parameter init (shapes match the PyTorch module)."""
    keys = jax.random.split(key, 2 * (n_layers + 1) + 1)

    # a: (n_layers, 1), xavier_uniform with gain 1.4 (fan_in=1, fan_out=n_layers)
    gain = 1.4
    bound_a = gain * jnp.sqrt(6.0 / (1 + n_layers))
    a = jax.random.uniform(keys[0], (n_layers, 1), jnp.float32, -bound_a, bound_a)

    dims = [x_dim] + [n_hidden] * n_layers + [u_dim]
    weights, biases = [], []
    for li in range(n_layers + 1):
        d_in, d_out = dims[li], dims[li + 1]
        bound = 1.0 / jnp.sqrt(jnp.float32(d_in))  # PyTorch Linear default init range
        w = jax.random.uniform(keys[1 + 2 * li], (d_in, d_out), jnp.float32, -bound, bound)
        b = jax.random.uniform(keys[2 + 2 * li], (1, d_out), jnp.float32, -bound, bound)
        weights.append(w)
        biases.append(b)
    return a, weights, biases


if __name__ == "__main__":
    # 3 LAAF layers of width 32, x_dim=2 inputs, scalar output.
    # batch=512 with block_b=256 -> grid=(2,) parallel blocks (both v7x cores busy).
    n_layers, n_hidden, x_dim, u_dim = 3, 32, 2, 1
    batch = 512

    key = jax.random.PRNGKey(0)
    k_x, k_p = jax.random.split(key)
    x = jax.random.normal(k_x, (batch, x_dim), jnp.float32)
    a, weights, biases = init_params(k_p, n_layers, n_hidden, x_dim, u_dim)

    out = dnn_gaaf_forward(x, a, weights, biases, block_b=256)
    out = jax.block_until_ready(out)

    ref = dnn_gaaf_reference(x, a, weights, biases)
    assert out.shape == (batch, u_dim)
    assert jnp.allclose(out, ref, atol=1e-5, rtol=1e-5), "mismatch vs reference"

    print("KERNEL_OK")
</pallas_src>

<mosaic_0001>
module attributes {stable_mosaic.version = 11 : i64} {
  func.func @kernel(%arg0: i32, %arg1: memref<3xf32, #tpu.memory_space<smem>>, %arg2: memref<2x256xf32, #tpu.memory_space<vmem>>, %arg3: memref<32x2xf32, #tpu.memory_space<vmem>>, %arg4: memref<32x1xf32, #tpu.memory_space<vmem>>, %arg5: memref<32x32xf32, #tpu.memory_space<vmem>>, %arg6: memref<32x1xf32, #tpu.memory_space<vmem>>, %arg7: memref<32x32xf32, #tpu.memory_space<vmem>>, %arg8: memref<32x1xf32, #tpu.memory_space<vmem>>, %arg9: memref<1x32xf32, #tpu.memory_space<vmem>>, %arg10: memref<1x1xf32, #tpu.memory_space<vmem>>, %arg11: memref<1x256xf32, #tpu.memory_space<vmem>>) attributes {dimension_semantics = [#tpu.dimension_semantics<parallel>], iteration_bounds = array<i64: 2>, scalar_prefetch = 0 : i64, scratch_operands = 0 : i64, tpu.core_type = #tpu.core_type<tc>, window_params = [{transform_indices = @transform_0, window_bounds = array<i64: 3>}, {transform_indices = @transform_1, window_bounds = array<i64: 2, 256>}, {pipeline_mode = #tpu.pipeline_mode<synchronous>, transform_indices = @transform_2, window_bounds = array<i64: 32, 2>}, {pipeline_mode = #tpu.pipeline_mode<synchronous>, transform_indices = @transform_3, window_bounds = array<i64: 32, 1>}, {pipeline_mode = #tpu.pipeline_mode<synchronous>, transform_indices = @transform_4, window_bounds = array<i64: 32, 32>}, {pipeline_mode = #tpu.pipeline_mode<synchronous>, transform_indices = @transform_5, window_bounds = array<i64: 32, 1>}, {pipeline_mode = #tpu.pipeline_mode<synchronous>, transform_indices = @transform_6, window_bounds = array<i64: 32, 32>}, {pipeline_mode = #tpu.pipeline_mode<synchronous>, transform_indices = @transform_7, window_bounds = array<i64: 32, 1>}, {pipeline_mode = #tpu.pipeline_mode<synchronous>, transform_indices = @transform_8, window_bounds = array<i64: 1, 32>}, {pipeline_mode = #tpu.pipeline_mode<synchronous>, transform_indices = @transform_9, window_bounds = array<i64: 1, 1>}, {transform_indices = @transform_10, window_bounds = array<i64: 1, 256>}]} {
    %c0 = arith.constant 0 : index
    %c0_0 = arith.constant 0 : index
    %0 = vector.load %arg2[%c0, %c0_0] : memref<2x256xf32, #tpu.memory_space<vmem>>, vector<2x256xf32>
    %c0_1 = arith.constant 0 : index
    %c0_2 = arith.constant 0 : index
    %1 = vector.load %arg3[%c0_1, %c0_2] : memref<32x2xf32, #tpu.memory_space<vmem>>, vector<32x2xf32>
    %c0_3 = arith.constant 0 : index
    %c0_4 = arith.constant 0 : index
    %2 = vector.load %arg4[%c0_3, %c0_4] : memref<32x1xf32, #tpu.memory_space<vmem>>, vector<32x1xf32>
    %3 = vector.extract_strided_slice %1 {offsets = [0, 0], sizes = [32, 1], strides = [1, 1]} : vector<32x2xf32> to vector<32x1xf32>
    %4 = vector.extract_strided_slice %0 {offsets = [0, 0], sizes = [1, 256], strides = [1, 1]} : vector<2x256xf32> to vector<1x256xf32>
    %5 = vector.broadcast %3 : vector<32x1xf32> to vector<32x256xf32>
    %6 = vector.broadcast %4 : vector<1x256xf32> to vector<32x256xf32>
    %7 = arith.mulf %5, %6 : vector<32x256xf32>
    %8 = vector.broadcast %2 : vector<32x1xf32> to vector<32x256xf32>
    %9 = arith.addf %7, %8 : vector<32x256xf32>
    %10 = vector.extract_strided_slice %1 {offsets = [0, 1], sizes = [32, 1], strides = [1, 1]} : vector<32x2xf32> to vector<32x1xf32>
    %11 = vector.extract_strided_slice %0 {offsets = [1, 0], sizes = [1, 256], strides = [1, 1]} : vector<2x256xf32> to vector<1x256xf32>
    %12 = vector.broadcast %10 : vector<32x1xf32> to vector<32x256xf32>
    %13 = vector.broadcast %11 : vector<1x256xf32> to vector<32x256xf32>
    %14 = arith.mulf %12, %13 : vector<32x256xf32>
    %15 = arith.addf %9, %14 : vector<32x256xf32>
    %c0_5 = arith.constant 0 : index
    %16 = memref.load %arg1[%c0_5] : memref<3xf32, #tpu.memory_space<smem>>
    %17 = vector.broadcast %16 : f32 to vector<32x256xf32>
    %18 = arith.mulf %17, %15 : vector<32x256xf32>
    %19 = math.tanh %18 : vector<32x256xf32>
    %c0_6 = arith.constant 0 : index
    %c0_7 = arith.constant 0 : index
    %20 = vector.load %arg5[%c0_6, %c0_7] : memref<32x32xf32, #tpu.memory_space<vmem>>, vector<32x32xf32>
    %c0_8 = arith.constant 0 : index
    %c0_9 = arith.constant 0 : index
    %21 = vector.load %arg6[%c0_8, %c0_9] : memref<32x1xf32, #tpu.memory_space<vmem>>, vector<32x1xf32>
    %cst = arith.constant dense<0.000000e+00> : vector<32x256xf32>
    %22 = tpu.matmul %20, %19, %cst {dimension_numbers = #tpu.dot_dimension_numbers<[1], [0], [0], [1], [0, 0, 1, 1], [], []>} : vector<32x32xf32>, vector<32x256xf32>, vector<32x256xf32> -> vector<32x256xf32>
    %23 = vector.broadcast %21 : vector<32x1xf32> to vector<32x256xf32>
    %24 = arith.addf %22, %23 : vector<32x256xf32>
    %c1 = arith.constant 1 : index
    %25 = memref.load %arg1[%c1] : memref<3xf32, #tpu.memory_space<smem>>
    %26 = vector.broadcast %25 : f32 to vector<32x256xf32>
    %27 = arith.mulf %26, %24 : vector<32x256xf32>
    %28 = math.tanh %27 : vector<32x256xf32>
    %c0_10 = arith.constant 0 : index
    %c0_11 = arith.constant 0 : index
    %29 = vector.load %arg7[%c0_10, %c0_11] : memref<32x32xf32, #tpu.memory_space<vmem>>, vector<32x32xf32>
    %c0_12 = arith.constant 0 : index
    %c0_13 = arith.constant 0 : index
    %30 = vector.load %arg8[%c0_12, %c0_13] : memref<32x1xf32, #tpu.memory_space<vmem>>, vector<32x1xf32>
    %cst_14 = arith.constant dense<0.000000e+00> : vector<32x256xf32>
    %31 = tpu.matmul %29, %28, %cst_14 {dimension_numbers = #tpu.dot_dimension_numbers<[1], [0], [0], [1], [0, 0, 1, 1], [], []>} : vector<32x32xf32>, vector<32x256xf32>, vector<32x256xf32> -> vector<32x256xf32>
    %32 = vector.broadcast %30 : vector<32x1xf32> to vector<32x256xf32>
    %33 = arith.addf %31, %32 : vector<32x256xf32>
    %c2 = arith.constant 2 : index
    %34 = memref.load %arg1[%c2] : memref<3xf32, #tpu.memory_space<smem>>
    %35 = vector.broadcast %34 : f32 to vector<32x256xf32>
    %36 = arith.mulf %35, %33 : vector<32x256xf32>
    %37 = math.tanh %36 : vector<32x256xf32>
    %c0_15 = arith.constant 0 : index
    %c0_16 = arith.constant 0 : index
    %38 = vector.load %arg9[%c0_15, %c0_16] : memref<1x32xf32, #tpu.memory_space<vmem>>, vector<1x32xf32>
    %c0_17 = arith.constant 0 : index
    %c0_18 = arith.constant 0 : index
    %39 = vector.load %arg10[%c0_17, %c0_18] : memref<1x1xf32, #tpu.memory_space<vmem>>, vector<1x1xf32>
    %cst_19 = arith.constant dense<0.000000e+00> : vector<1x256xf32>
    %40 = tpu.matmul %38, %37, %cst_19 {dimension_numbers = #tpu.dot_dimension_numbers<[1], [0], [0], [1], [0, 0, 1, 1], [], []>} : vector<1x32xf32>, vector<32x256xf32>, vector<1x256xf32> -> vector<1x256xf32>
    %41 = vector.broadcast %39 : vector<1x1xf32> to vector<1x256xf32>
    %42 = arith.addf %40, %41 : vector<1x256xf32>
    %c0_20 = arith.constant 0 : index
    %c0_21 = arith.constant 0 : index
    %43 = vector.load %arg11[%c0_20, %c0_21] : memref<1x256xf32, #tpu.memory_space<vmem>>, vector<1x256xf32>
    tpu.vector_store %arg11[%c0_20, %c0_21], %42 {strides = array<i32>} : memref<1x256xf32, #tpu.memory_space<vmem>>, vector<1x256xf32>,
    return
  }
  func.func @transform_0(%arg0: i32) -> i32 {
    %c0_i32 = arith.constant 0 : i32
    %c0_i32_0 = arith.constant 0 : i32
    return %c0_i32 : i32
  }
  func.func @transform_1(%arg0: i32) -> (i32, i32) {
    %c0_i32 = arith.constant 0 : i32
    %c0_i32_0 = arith.constant 0 : i32
    return %c0_i32, %arg0 : i32, i32
  }
  func.func @transform_2(%arg0: i32) -> (i32, i32) {
    %c0_i32 = arith.constant 0 : i32
    %c0_i32_0 = arith.constant 0 : i32
    %c0_i32_1 = arith.constant 0 : i32
    return %c0_i32, %c0_i32_0 : i32, i32
  }
  func.func @transform_3(%arg0: i32) -> (i32, i32) {
    %c0_i32 = arith.constant 0 : i32
    %c0_i32_0 = arith.constant 0 : i32
    %c0_i32_1 = arith.constant 0 : i32
    return %c0_i32, %c0_i32_0 : i32, i32
  }
  func.func @transform_4(%arg0: i32) -> (i32, i32) {
    %c0_i32 = arith.constant 0 : i32
    %c0_i32_0 = arith.constant 0 : i32
    %c0_i32_1 = arith.constant 0 : i32
    return %c0_i32, %c0_i32_0 : i32, i32
  }
  func.func @transform_5(%arg0: i32) -> (i32, i32) {
    %c0_i32 = arith.constant 0 : i32
    %c0_i32_0 = arith.constant 0 : i32
    %c0_i32_1 = arith.constant 0 : i32
    return %c0_i32, %c0_i32_0 : i32, i32
  }
  func.func @transform_6(%arg0: i32) -> (i32, i32) {
    %c0_i32 = arith.constant 0 : i32
    %c0_i32_0 = arith.constant 0 : i32
    %c0_i32_1 = arith.constant 0 : i32
    return %c0_i32, %c0_i32_0 : i32, i32
  }
  func.func @transform_7(%arg0: i32) -> (i32, i32) {
    %c0_i32 = arith.constant 0 : i32
    %c0_i32_0 = arith.constant 0 : i32
    %c0_i32_1 = arith.constant 0 : i32
    return %c0_i32, %c0_i32_0 : i32, i32
  }
  func.func @transform_8(%arg0: i32) -> (i32, i32) {
    %c0_i32 = arith.constant 0 : i32
    %c0_i32_0 = arith.constant 0 : i32
    %c0_i32_1 = arith.constant 0 : i32
    return %c0_i32, %c0_i32_0 : i32, i32
  }
  func.func @transform_9(%arg0: i32) -> (i32, i32) {
    %c0_i32 = arith.constant 0 : i32
    %c0_i32_0 = arith.constant 0 : i32
    %c0_i32_1 = arith.constant 0 : i32
    return %c0_i32, %c0_i32_0 : i32, i32
  }
  func.func @transform_10(%arg0: i32) -> (i32, i32) {
    %c0_i32 = arith.constant 0 : i32
    %c0_i32_0 = arith.constant 0 : i32
    return %c0_i32, %arg0 : i32, i32
  }
}

</mosaic_0001>

<bundles_post_ra>
// kernel: tpu_custom_call.1
= control target key start
LH: loop header
LB: loop body
LE: loop exit
PB: predicated region body
PF: predicated region fallthrough
CT: control target
= control target key end

     0   :  { %s1550_s0 = inlined_call_operand.vmem [shape: f32[3], index: 0, kind: input, shape index: {}]   ;;  %s1551_s1 = inlined_call_operand.vmem [shape: f32[2,512], index: 1, kind: input, shape index: {}]   ;;  %s1552_s2 = inlined_call_operand.vmem [shape: f32[32,2], index: 2, kind: input, shape index: {}]   ;;  %s1553_s3 = inlined_call_operand.vmem [shape: f32[32,1], index: 3, kind: input, shape index: {}]   ;;  %s1554_s4 = inlined_call_operand.vmem [shape: f32[32,32], index: 4, kind: input, shape index: {}]   ;;  %s1555_s5 = inlined_call_operand.vmem [shape: f32[32,1], index: 5, kind: input, shape index: {}]   ;;  %s1556_s6 = inlined_call_operand.vmem [shape: f32[32,32], index: 6, kind: input, shape index: {}]   ;;  %s1557_s7 = inlined_call_operand.vmem [shape: f32[32,1], index: 7, kind: input, shape index: {}]   ;;  %s1558_s8 = inlined_call_operand.vmem [shape: f32[1,32], index: 8, kind: input, shape index: {}]   ;;  %s1559_s9 = inlined_call_operand.<no memory space> [shape: f32[1,1], index: 9, kind: input, shape index: {}]   ;;  %s1560_s10 = inlined_call_operand.hbm [shape: f32[1,512], index: 10, kind: output, shape index: {}]  }
   0x1   :  { %v15_v0 = vstv %s1559_s9 }
   0x2   :  { %16 = vst [vmem:[#allocation2] sm:$0x1] %v15_v0 }
   0x3   :  { %17 = vsyncpa [#allocation5], 0 }
   0x4   :  { %18 = vsyncpa [#allocation4], 0 }
   0x5   :  { %20 = vsyncpa [#allocation4 + $0x1], 0  ;;  %s1325_s15 = smov 0   ;;  %s1327_s16 = smov 0  }
   0x6   :  { %s1329_s17 = smov 0   ;;  %s1331_s18 = smov 0  }
   0x7 LB: > { %s1346_s9 = sadd.s32 4294967295, %s1259_s18   ;;  %s1018_s19 = sadd.s32 4294967294, %s1259_s18   ;;  %s1259_s18 = sphi %s1331_s18, %s1567_s18   ;;  %s1255_s17 = sphi %s1329_s17, %s1566_s17   ;;  %s1251_s16 = sphi %s1327_s16, %s1565_s16   ;;  %s1247_s15 = sphi %s1325_s15, %s1564_s15  }
   0x8   : > { %s1350_s20 = sadd.s32 1, %s1259_s18   ;;  %s248_s21 = sadd.s32 1, %s1255_s17 }
   0x9   : > { %s245_s22 = ssub.s32 %s1259_s18, %s1350_s20  ;;  %p258_p0 = scmp.ne.s32.totalorder %s1255_s17, %s1251_s16 }
   0xa   : > { %p246_p1 = scmp.eq.s32.totalorder %s245_s22, 0  ;;  %p259_p2 = scmp.eq.s32.totalorder %s1346_s9, 1 }
   0xb   : > { %p264_p3 = scmp.ne.s32.totalorder %s1251_s16, %s1247_s15  ;;  %p265_p4 = scmp.eq.s32.totalorder %s1018_s19, 1 }
   0xc   : > { %s1361_s23 = scalar_select %p246_p1, %s1255_s17, %s248_s21  }
   0xd   : > { %p1363_p5 = por %p259_p2, %p258_p0  ;;  %p1367_p6 = por %p265_p4, %p264_p3 }
   0xe   : > { %p1019_p7 = scmp.ge.s32.totalorder %s1259_s18, 1  ;;  %p272_p8 = scmp.lt.s32.totalorder %s1259_s18, 3 }
   0xf   : > { %p1082_p9 = scmp.eq.s32.totalorder %s1346_s9, 0  ;;  %s285_s29 = sshll.u32 %s1550_s0, 4  ;;  %s286_s29 = int_to_ptr.vmem [resolvable:$true] %s285_s29 }
  0x10   : > { %p1374_p10 = pnand %p1019_p7, %p272_p8  ;;  %s1178_s30 = scalar_lea.vmem %s286_s29, 16 }
  0x11   : > { %p1179_p13 = scmp.ne.s32.totalorder %s286_s29, %s1178_s30  ;;  %p1186_p3 = scmp.lt.s32.totalorder %s286_s29, %s286_s29 }
  0x12   : > { %p1074_p11 = pneg %p1374_p10  ;;  %p1187_p4 = scmp.lt.s32.totalorder %s1178_s30, %s1178_s30 }
  0x14   : > { %p1075_p12 = pnand %p1082_p9, %p1074_p11  ;;  %p1188_p7 = por %p1187_p4, %p1186_p3 }
  0x16   : > { %p1180_p0 = pneg %p1075_p12 }
  0x18   : > { %p1181_p1 = pnand %p1180_p0, %p1179_p13 }
  0x1a   : > { %p1182_p2 = pneg %p1181_p1 }
  0x1c   : > { %p1189_p8 = pnand %p1188_p7, %p1182_p2 }
  0x1e   : > { %1192 = shalt.err (!%p1189_p8)
}
  0x1f   : > { %s1261_s11 = smov [#allocation3]   ;;  %331 = sbr.rel (%p1374_p10) target bundleno = 949 (0x3b5), region = 60 }
  0x20   : > { %1077 = dma.vmem_to_smem (!%p1075_p12), %s286_s29, 16, %s1261_s11, [#allocation5]  }
  0x26   : > { %1238 = dma.done.wait (%p1082_p9), [#allocation5], 16  }
  0x27   : > { %1240 = vsyncadd (%p1082_p9), [#allocation5], 4294967280 }
  0x28   : > { %337 = sfence }
  0x29   : > { %v382_v1 = vld [vmem:[%s1553_s3] sm:$0xff]  ;;  %v1262_v3 = vmov 0   ;;  %v383_v4 = vld [vmem:[%s1553_s3 + $0x8] sm:$0xff]  ;;  %v381_v6 = vld [vmem:[%s1552_s2 + $0x18] sm:$0xff]  ;;  %v1263_v7 = vmov 1   ;;  %v1264_v11 = vmov 0.0   ;;  %v407_v21 = vlaneseq }
  0x2a   : > { %v378_v2 = vld [vmem:[%s1552_s2] sm:$0xff]  ;;  %1123 = vset.pattern.permute.xlu1 %v1262_v3  ;;  %1122 = vset.pattern.permute.xlu0 %v1262_v3  ;;  %v379_v5 = vld [vmem:[%s1552_s2 + $0x8] sm:$0xff]  ;;  %v380_v8 = vld [vmem:[%s1552_s2 + $0x10] sm:$0xff]  ;;  %s1025_s28 = sshll.u32 %s1346_s9, 1  ;;  %s511_s13 = sld [smem:[#allocation3]]  ;;  %vm557_vm0 = vcmask 261120  }
  0x2b   : > { %435 = vperm.xlu1 %1123, %v382_v1   ;;  %388 = vperm.xlu0 %1122, %v378_v2   ;;  %v384_v9 = vld [vmem:[%s1553_s3 + $0x10] sm:$0xff]  ;;  %v385_v10 = vld [vmem:[%s1553_s3 + $0x18] sm:$0xff]  ;;  %v533_v12 = vld [vmem:[%s1555_s5] sm:$0xff]  ;;  %p371_p9 = scmp.lt.s32.totalorder %s1025_s28, 3  ;;  %v1443_v22 = vshrl.u32 %v407_v21, 7  ;;  %s1031_s30 = sld [smem:[#allocation3 + $0x1]] }
  0x2c   : > { %634 = vmatprep.mubr.f32.mxu0 %v1264_v11  ;;  %781 = vmatprep.mubr.f32.mxu1 %v1264_v11  ;;  %v534_v13 = vld [vmem:[%s1555_s5 + $0x8] sm:$0xff]  ;;  %v535_v14 = vld [vmem:[%s1555_s5 + $0x10] sm:$0xff]  ;;  %v681_v15 = vld [vmem:[%s1557_s7] sm:$0xff]  ;;  %s1036_s27 = sld [smem:[#allocation3 + $0x2]]  ;;  %vm929_vm1 = vcmp.lt.s32.totalorder %v407_v21, 256 }
  0x2d   : > { %v536_v16 = vld [vmem:[%s1555_s5 + $0x18] sm:$0xff]  ;;  %v683_v17 = vld [vmem:[%s1557_s7 + $0x10] sm:$0xff]  ;;  %v682_v18 = vld [vmem:[%s1557_s7 + $0x8] sm:$0xff]  ;;  %s1569_s28 = smov (!%p371_p9, %s1025_s28), 3  ;;  %v1449_v23 = vsub.s32 0, %v1443_v22  ;;  %v413_v24 = vsub.s32 2, %v1443_v22 }
  0x2e   : > { %v825_v19 = vld [vmem:[#allocation2] sm:$0x1]  ;;  %v684_v20 = vld [vmem:[%s1557_s7 + $0x18] sm:$0xff]  ;;  %s1026_s29 = sshll.u32 %s1569_s28, 1  ;;  %v479_v26 = vsub.s32 1, %v1443_v22  ;;  %v483_v27 = vsub.s32 3, %v1443_v22 }
  0x2f   : > { %440 = vperm.xlu1 %1123, %v383_v4   ;;  %393 = vperm.xlu0 %1122, %v379_v5   ;;  %s374_s12 = scalar_lea.vmem %s1551_s1, %s1026_s29 }
  0x30   : > { %v377_v25 = vld [vmem:[%s374_s12] sm:$0xf]  ;;  %v512_v50 = vstv %s511_s13  ;;  %s1043_s12 = sshll.u32 %s1346_s9, 5  ;;  %s1266_s9 = smov [#allocation6]  }
  0x31   : > { %v410_v30 = vrot.slane %v377_v25, %v1449_v23  ;;  %v414_v31 = vrot.slane %v377_v25, %v413_v24  ;;  %v480_v32 = vrot.slane %v377_v25, %v479_v26  ;;  %v484_v33 = vrot.slane %v377_v25, %v483_v27  ;;  %s1508_s22 = scalar_lea.hbm %s1560_s10, %s1043_s12  ;;  %s1197_s28 = sshll.u32 %s1266_s9, 4  ;;  %s1198_s28 = int_to_ptr.vmem [resolvable:$false] %s1197_s28 }
  0x32   : > { %s1199_s29 = scalar_lea.vmem %s1198_s28, 64 }
  0x33   : > { %1124 = vset.pattern.permute.xlu1 %v1263_v7  ;;  %403 = vperm.xlu0 %1122, %v381_v6   ;;  %v420_v34 = vrot.slane %v410_v30, %v1449_v23  ;;  %v424_v35 = vrot.slane %v414_v31, %v1449_v23  ;;  %v490_v40 = vrot.slane %v480_v32, %v479_v26 }
  0x34   : > { %466 = vperm.xlu1 %1124, %v379_v5   ;;  %v494_v41 = vrot.slane %v484_v33, %v479_v26 }
  0x37   : > { %1126 = vset.pattern.permute.xlu0 %v1263_v7 }
  0x38   : > { %1125 = vset.pattern.permute.xlu1 %v1262_v3  ;;  %462 = vperm.xlu0 %1126, %v378_v2  }
  0x39   : > { %398 = vperm.xlu1 %1125, %v380_v8  }
  0x3c   : > { %470 = vperm.xlu0 %1126, %v380_v8  }
  0x3d   : > { %445 = vperm.xlu1 %1125, %v384_v9  }
  0x40   : > { %1129 = vset.pattern.permute.xlu0 %v1262_v3 }
  0x41   : > { %450 = vperm.xlu1 %1125, %v385_v10   ;;  %544 = vperm.xlu0 %1129, %v534_v13  }
  0x45   : > { %1127 = vset.pattern.permute.xlu1 %v1263_v7  ;;  %687 = vperm.xlu0 %1129, %v681_v15  }
  0x46   : > { %474 = vperm.xlu1 %1127, %v381_v6  }
  0x49   : > { %697 = vperm.xlu0 %1129, %v683_v17  }
  0x4a   : > { %1128 = vset.pattern.permute.xlu1 %v1262_v3 }
  0x4b   : > { %539 = vperm.xlu1 %1128, %v533_v12  }
  0x4d   : > { %828 = vperm.xlu0 %1129, %v825_v19  }
  0x4f   : > { %549 = vperm.xlu1 %1128, %v535_v14  }
  0x53   : > { %554 = vperm.xlu1 %1128, %v536_v16  }
  0x57   : > { %692 = vperm.xlu1 %1128, %v682_v18  }
  0x5b   : > { %702 = vperm.xlu1 %1128, %v684_v20  }
  0xaa   : > { %v436_v28 = vpop.permute.xlu1 %435  ;;  %v389_v29 = vpop.permute.xlu0 %388 }
  0xab   : > { %v425_v43 = vmul.f32 %v420_v34, %v389_v29  ;;  %v426_v44 = vmul.f32 %v424_v35, %v389_v29 }
  0xad   : > { %v453_v53 = vadd.f32 %v436_v28, %v425_v43  ;;  %v454_v55 = vadd.f32 %v436_v28, %v426_v44  ;;  %v531_v43 = vld [vmem:[%s1554_s4 + $0x10] sm:$0xff]  ;;  %v532_v44 = vld [vmem:[%s1554_s4 + $0x18] sm:$0xff] }
  0xae   : > { %v441_v36 = vpop.permute.xlu1 %440  ;;  %v394_v37 = vpop.permute.xlu0 %393 }
  0xaf   : > { %v427_v38 = vmul.f32 %v420_v34, %v394_v37  ;;  %v428_v39 = vmul.f32 %v424_v35, %v394_v37 }
  0xb1   : > { %v455_v46 = vadd.f32 %v441_v36, %v427_v38  ;;  %v456_v47 = vadd.f32 %v441_v36, %v428_v39 }
  0xb2   : > { %v404_v42 = vpop.permute.xlu0 %403 }
  0xb3   : > { %v467_v45 = vpop.permute.xlu1 %466  ;;  %v431_v13 = vmul.f32 %v420_v34, %v404_v42  ;;  %v432_v14 = vmul.f32 %v424_v35, %v404_v42  ;;  %v530_v42 = vld [vmem:[%s1554_s4 + $0x8] sm:$0xff] }
  0xb4   : > { %v497_v48 = vmul.f32 %v490_v40, %v467_v45  ;;  %v498_v49 = vmul.f32 %v494_v41, %v467_v45 }
  0xb6   : > { %v505_v51 = vadd.f32 %v497_v48, %v455_v46  ;;  %v506_v52 = vadd.f32 %v498_v49, %v456_v47  ;;  %v660_v47 = vstv %s1031_s30  ;;  %s367_s30 = sand.u32 1, %s1251_s16  }
  0xb7   : > { %v463_v54 = vpop.permute.xlu0 %462  ;;  %s1024_s11 = sshll.u32 %s367_s30, 1  ;;  %s933_s26 = scalar_lea.sflag [#allocation4], %s367_s30 }
  0xb8   : > { %v515_v56 = vmul.f32 %v512_v50, %v505_v51  ;;  %v495_v57 = vmul.f32 %v490_v40, %v463_v54  ;;  %v496_v58 = vmul.f32 %v494_v41, %v463_v54  ;;  %v399_v59 = vpop.permute.xlu1 %398  ;;  %v516_v60 = vmul.f32 %v512_v50, %v506_v52  ;;  %s369_s13 = scalar_lea.vmem [#allocation6], %s1024_s11 }
  0xb9   : > { %v429_v63 = vmul.f32 %v420_v34, %v399_v59  ;;  %v430_v4 = vmul.f32 %v424_v35, %v399_v59  ;;  %s947_s14 = sshll.u32 %s369_s13, 4  ;;  %s1510_s14 = int_to_ptr.vmem [resolvable:$true] %s947_s14 }
  0xba   : > { %v503_v61 = vadd.f32 %v495_v57, %v453_v53  ;;  %v504_v62 = vadd.f32 %v496_v58, %v454_v55  ;;  %1130 = vtanh.f32 %v515_v56  ;;  %p1200_p13 = scmp.lt.s32.totalorder %s1510_s14, %s1198_s28 }
  0xbb   : > { %v471_v0 = vpop.permute.xlu0 %470  ;;  %1132 = vtanh.f32 %v516_v60 }
  0xbc   : > { %v513_v1 = vmul.f32 %v512_v50, %v503_v61  ;;  %v514_v2 = vmul.f32 %v512_v50, %v504_v62  ;;  %v446_v3 = vpop.permute.xlu1 %445  ;;  %v499_v6 = vmul.f32 %v490_v40, %v471_v0  ;;  %v500_v8 = vmul.f32 %v494_v41, %v471_v0 }
  0xbd   : > { %v457_v5 = vadd.f32 %v446_v3, %v429_v63  ;;  %v458_v7 = vadd.f32 %v446_v3, %v430_v4 }
  0xbe   : > { %1134 = vtanh.f32 %v513_v1 }
  0xbf   : > { %1136 = vtanh.f32 %v514_v2  ;;  %v507_v10 = vadd.f32 %v499_v6, %v457_v5  ;;  %v508_v12 = vadd.f32 %v500_v8, %v458_v7 }
  0xc0   : > { %v451_v9 = vpop.permute.xlu1 %450  ;;  %v545_v52 = vpop.permute.xlu0 %544 }
  0xc1   : > { %v517_v15 = vmul.f32 %v512_v50, %v507_v10  ;;  %v459_v18 = vadd.f32 %v451_v9, %v431_v13  ;;  %v460_v19 = vadd.f32 %v451_v9, %v432_v14  ;;  %v518_v26 = vmul.f32 %v512_v50, %v508_v12 }
  0xc3   : > { %1138 = vtanh.f32 %v517_v15 }
  0xc4   : > { %v1131_v17 = vpop.eup %1130  ;;  %1140 = vtanh.f32 %v518_v26  ;;  %v677_v26 = vld [vmem:[%s1556_s6] sm:$0xff] }
  0xc5   : > { %v475_v16 = vpop.permute.xlu1 %474  ;;  %v1133_v25 = vpop.eup %1132 }
  0xc6   : > { %v501_v20 = vmul.f32 %v490_v40, %v475_v16  ;;  %v502_v24 = vmul.f32 %v494_v41, %v475_v16  ;;  %v529_v41 = vld [vmem:[%s1554_s4] sm:$0xff] }
  0xc8   : > { %v1135_v27 = vpop.eup %1134  ;;  %v509_v28 = vadd.f32 %v501_v20, %v459_v18  ;;  %v510_v29 = vadd.f32 %v502_v24, %v460_v19 }
  0xc9   : > { %v1137_v30 = vpop.eup %1136  ;;  %v1046_v31 = vpack.c.bf16 %v1131_v17, %v1135_v27  ;;  %v678_v27 = vld [vmem:[%s1556_s6 + $0x8] sm:$0xff] }
  0xca   : > { %v519_v32 = vmul.f32 %v512_v50, %v509_v28  ;;  %v520_v33 = vmul.f32 %v512_v50, %v510_v29  ;;  %v1044_v36 = vpack.c.bf16 %v1133_v25, %v1137_v30  ;;  %v540_v45 = vpop.permute.xlu1 %539  ;;  %v679_v28 = vld [vmem:[%s1556_s6 + $0x10] sm:$0xff]  ;;  %v680_v29 = vld [vmem:[%s1556_s6 + $0x18] sm:$0xff]  ;;  %v688_v30 = vpop.permute.xlu0 %687 }
  0xcc   : > { %1142 = vtanh.f32 %v519_v32  ;;  %1045 = vmatprep.subr.bf16.mxu0 %v1044_v36  ;;  %v807_v32 = vstv %s1036_s27  ;;  %s1193_s27 = scalar_lea.vmem %s1510_s14, 32 }
  0xcd   : > { %1144 = vtanh.f32 %v520_v33  ;;  %1047 = vmatpush1.bf16.msra.mxu0 %v1046_v31  ;;  %v1139_v34 = vpop.eup %1138  ;;  %p1194_p10 = scmp.ne.s32.totalorder %s1510_s14, %s1193_s27  ;;  %p1201_p0 = scmp.lt.s32.totalorder %s1199_s29, %s1193_s27 }
  0xce   : > { %v1141_v35 = vpop.eup %1140  ;;  %v550_v57 = vpop.permute.xlu1 %549 }
  0xcf   : > { %p1195_p11 = pnand %p1194_p10, %p1363_p5  ;;  %p1202_p1 = por %p1201_p0, %p1200_p13 }
  0xd1   : > { %p1196_p12 = pneg %p1195_p11 }
  0xd2   : > { %v555_v2 = vpop.permute.xlu1 %554 }
  0xd3   : > { %p1203_p2 = pnand %p1202_p1, %p1196_p12 }
  0xd6   : > { %v1143_v37 = vpop.eup %1142 }
  0xd7   : > { %v1145_v38 = vpop.eup %1144  ;;  %v1050_v39 = vpack.c.bf16 %v1143_v37, %v1139_v34  ;;  %v693_v37 = vpop.permute.xlu1 %692 }
  0xd8   : > { %v1048_v40 = vpack.c.bf16 %v1145_v38, %v1141_v35 }
  0xda   : > { %1049 = vmatprep.subr.bf16.mxu0 %v1048_v40 }
  0xdb   : > { %1051 = vmatpush1.bf16.msra.mxu0 %v1050_v39 }
  0xde   : > { %1027 = vmatmul.mubr.msk.f32.vlgmr.msra.gmra.mrb[0].mxu0 %vm557_vm0, %v529_v41 }
  0xdf   : > { %640 = vmatprep.mubr.f32.mxu0 %v1264_v11 }
  0xe2   : > { %1028 = vmatmul.mubr.msk.f32.gmra.mrb[2].mxu0 %vm557_vm0, %v530_v42 }
  0xe3   : > { %646 = vmatprep.mubr.f32.mxu0 %v1264_v11 }
  0xe6   : > { %1029 = vmatmul.mubr.msk.f32.gmra.mrb[4].mxu0 %vm557_vm0, %v531_v43  ;;  %v698_v43 = vpop.permute.xlu0 %697 }
  0xe7   : > { %652 = vmatprep.mubr.f32.mxu0 %v1264_v11 }
  0xea   : > { %1030 = vmatmul.mubr.msk.f32.gmra.mrb[6].mxu0 %vm557_vm0, %v532_v44 }
  0xeb   : > { %902 = vmatprep.mubr.f32.mxu0 %v1264_v11 }
 0x1b1   : > { %v636_v46 = vpop.f32.mrb[0].mxu0 }
 0x1b2   : > { %v637_v48 = vadd.f32 %v636_v46, %v540_v45  ;;  %v638_v49 = vpop.f32.mrb[1].mxu0 }
 0x1b3   : > { %v639_v50 = vadd.f32 %v638_v49, %v540_v45 }
 0x1b4   : > { %v661_v51 = vmul.f32 %v660_v47, %v637_v48 }
 0x1b5   : > { %v662_v53 = vmul.f32 %v660_v47, %v639_v50  ;;  %v642_v54 = vpop.f32.mrb[2].mxu0  ;;  %v703_v50 = vpop.permute.xlu1 %702 }
 0x1b6   : > { %v643_v55 = vadd.f32 %v642_v54, %v545_v52  ;;  %v644_v56 = vpop.f32.mrb[3].mxu0  ;;  %1146 = vtanh.f32 %v661_v51 }
 0x1b7   : > { %v645_v58 = vadd.f32 %v644_v56, %v545_v52  ;;  %1148 = vtanh.f32 %v662_v53 }
 0x1b8   : > { %v663_v59 = vmul.f32 %v660_v47, %v643_v55 }
 0x1b9   : > { %v664_v60 = vmul.f32 %v660_v47, %v645_v58  ;;  %v648_v61 = vpop.f32.mrb[4].mxu0 }
 0x1ba   : > { %1150 = vtanh.f32 %v663_v59  ;;  %v649_v62 = vadd.f32 %v648_v61, %v550_v57  ;;  %v650_v63 = vpop.f32.mrb[5].mxu0 }
 0x1bb   : > { %1152 = vtanh.f32 %v664_v60  ;;  %v651_v0 = vadd.f32 %v650_v63, %v550_v57 }
 0x1bc   : > { %v665_v1 = vmul.f32 %v660_v47, %v649_v62 }
 0x1bd   : > { %v666_v3 = vmul.f32 %v660_v47, %v651_v0  ;;  %v654_v4 = vpop.f32.mrb[6].mxu0 }
 0x1be   : > { %v655_v5 = vadd.f32 %v654_v4, %v555_v2  ;;  %v656_v6 = vpop.f32.mrb[7].mxu0  ;;  %1154 = vtanh.f32 %v665_v1 }
 0x1bf   : > { %v657_v7 = vadd.f32 %v656_v6, %v555_v2  ;;  %1156 = vtanh.f32 %v666_v3  ;;  %v824_v6 = vld [vmem:[%s1558_s8] sm:$0x1] }
 0x1c0   : > { %v667_v8 = vmul.f32 %v660_v47, %v655_v5  ;;  %v1147_v10 = vpop.eup %1146 }
 0x1c1   : > { %v668_v9 = vmul.f32 %v660_v47, %v657_v7  ;;  %v1149_v12 = vpop.eup %1148  ;;  %v1265_v7 = vmov 1966171168  }
 0x1c2   : > { %1158 = vtanh.f32 %v667_v8  ;;  %v913_v8 = vunpack.c.l.s4 %v1265_v7 }
 0x1c3   : > { %1160 = vtanh.f32 %v668_v9  ;;  %v829_v9 = vpop.permute.xlu0 %828 }
 0x1c4   : > { %v1151_v13 = vpop.eup %1150 }
 0x1c5   : > { %v1153_v14 = vpop.eup %1152  ;;  %v1054_v15 = vpack.c.bf16 %v1151_v13, %v1147_v10  ;;  %v914_v10 = vunpack.c.0.s8 %v913_v8 }
 0x1c6   : > { %v1052_v16 = vpack.c.bf16 %v1153_v14, %v1149_v12  ;;  %v834_v12 = vrot.slane %v829_v9, %v1449_v23 }
 0x1c8   : > { %1053 = vmatprep.subr.bf16.mxu1 %v1052_v16  ;;  %v1155_v17 = vpop.eup %1154 }
 0x1c9   : > { %1055 = vmatpush1.bf16.msra.mxu1 %v1054_v15  ;;  %v1157_v18 = vpop.eup %1156 }
 0x1cc   : > { %v1159_v19 = vpop.eup %1158 }
 0x1cd   : > { %v1161_v20 = vpop.eup %1160  ;;  %v1058_v24 = vpack.c.bf16 %v1159_v19, %v1155_v17  ;;  %v917_v17 = vsub.s32 %v914_v10, %v1443_v22 }
 0x1ce   : > { %v1056_v25 = vpack.c.bf16 %v1161_v20, %v1157_v18 }
 0x1d0   : > { %1057 = vmatprep.subr.bf16.mxu1 %v1056_v25 }
 0x1d1   : > { %1059 = vmatpush1.bf16.msra.mxu1 %v1058_v24 }
 0x1d4   : > { %1032 = vmatmul.mubr.msk.f32.vlgmr.msra.gmra.mrb[0].mxu1 %vm557_vm0, %v677_v26 }
 0x1d5   : > { %787 = vmatprep.mubr.f32.mxu1 %v1264_v11 }
 0x1d8   : > { %1033 = vmatmul.mubr.msk.f32.gmra.mrb[2].mxu1 %vm557_vm0, %v678_v27 }
 0x1d9   : > { %793 = vmatprep.mubr.f32.mxu1 %v1264_v11 }
 0x1dc   : > { %1034 = vmatmul.mubr.msk.f32.gmra.mrb[4].mxu1 %vm557_vm0, %v679_v28 }
 0x1dd   : > { %799 = vmatprep.mubr.f32.mxu1 %v1264_v11 }
 0x1e0   : > { %1035 = vmatmul.mubr.msk.f32.gmra.mrb[6].mxu1 %vm557_vm0, %v680_v29 }
 0x2a7   : > { %v783_v31 = vpop.f32.mrb[0].mxu1 }
 0x2a8   : > { %v784_v33 = vadd.f32 %v783_v31, %v688_v30  ;;  %v785_v36 = vpop.f32.mrb[1].mxu1 }
 0x2a9   : > { %v786_v34 = vadd.f32 %v785_v36, %v688_v30 }
 0x2aa   : > { %v808_v35 = vmul.f32 %v807_v32, %v784_v33 }
 0x2ab   : > { %v809_v38 = vmul.f32 %v807_v32, %v786_v34  ;;  %v789_v39 = vpop.f32.mrb[2].mxu1 }
 0x2ac   : > { %v790_v40 = vadd.f32 %v789_v39, %v693_v37  ;;  %v791_v41 = vpop.f32.mrb[3].mxu1  ;;  %1162 = vtanh.f32 %v808_v35 }
 0x2ad   : > { %v792_v11 = vadd.f32 %v791_v41, %v693_v37  ;;  %1164 = vtanh.f32 %v809_v38 }
 0x2ae   : > { %v810_v42 = vmul.f32 %v807_v32, %v790_v40 }
 0x2af   : > { %v811_v44 = vmul.f32 %v807_v32, %v792_v11  ;;  %v795_v45 = vpop.f32.mrb[4].mxu1 }
 0x2b0   : > { %1166 = vtanh.f32 %v810_v42  ;;  %v796_v46 = vadd.f32 %v795_v45, %v698_v43  ;;  %v797_v47 = vpop.f32.mrb[5].mxu1 }
 0x2b1   : > { %1168 = vtanh.f32 %v811_v44  ;;  %v798_v48 = vadd.f32 %v797_v47, %v698_v43 }
 0x2b2   : > { %v812_v49 = vmul.f32 %v807_v32, %v796_v46 }
 0x2b3   : > { %v813_v51 = vmul.f32 %v807_v32, %v798_v48  ;;  %v801_v52 = vpop.f32.mrb[6].mxu1 }
 0x2b4   : > { %v802_v53 = vadd.f32 %v801_v52, %v703_v50  ;;  %v803_v54 = vpop.f32.mrb[7].mxu1  ;;  %1170 = vtanh.f32 %v812_v49 }
 0x2b5   : > { %v804_v55 = vadd.f32 %v803_v54, %v703_v50  ;;  %1172 = vtanh.f32 %v813_v51 }
 0x2b6   : > { %v814_v56 = vmul.f32 %v807_v32, %v802_v53  ;;  %v1163_v58 = vpop.eup %1162 }
 0x2b7   : > { %v815_v57 = vmul.f32 %v807_v32, %v804_v55  ;;  %v1165_v59 = vpop.eup %1164 }
 0x2b8   : > { %1174 = vtanh.f32 %v814_v56 }
 0x2b9   : > { %1176 = vtanh.f32 %v815_v57 }
 0x2ba   : > { %v1167_v60 = vpop.eup %1166 }
 0x2bb   : > { %v1169_v61 = vpop.eup %1168  ;;  %v1062_v62 = vpack.c.bf16 %v1167_v60, %v1163_v58 }
 0x2bc   : > { %v1060_v63 = vpack.c.bf16 %v1169_v61, %v1165_v59 }
 0x2be   : > { %1061 = vmatprep.subr.bf16.mxu0 %v1060_v63  ;;  %v1171_v0 = vpop.eup %1170 }
 0x2bf   : > { %1063 = vmatpush1.bf16.msra.mxu0 %v1062_v62  ;;  %v1173_v1 = vpop.eup %1172 }
 0x2c2   : > { %v1175_v2 = vpop.eup %1174 }
 0x2c3   : > { %v1177_v3 = vpop.eup %1176  ;;  %v1066_v4 = vpack.c.bf16 %v1175_v2, %v1171_v0 }
 0x2c4   : > { %v1064_v5 = vpack.c.bf16 %v1177_v3, %v1173_v1 }
 0x2c6   : > { %1065 = vmatprep.subr.bf16.mxu0 %v1064_v5 }
 0x2c7   : > { %1067 = vmatpush1.bf16.msra.mxu0 %v1066_v4 }
 0x2ca   : > { %1037 = vmatmul.mubr.msk.f32.vlgmr.msra.gmra.mrb[8].mxu0 %vm557_vm0, %v824_v6 }
 0x39d   : > { %v904_v13 = vpop.f32.mrb[8].mxu0 }
 0x39e   : > { %v905_v14 = vadd.f32 %v904_v13, %v834_v12  ;;  %v906_v15 = vpop.f32.mrb[9].mxu0 }
 0x39f   : > { %v907_v16 = vadd.f32 %v906_v15, %v834_v12 }
 0x3a1   : > { %v911_v18 = vcombine.low %v905_v14, %v907_v16 }
 0x3a3   : > { %v918_v19 = vrot.slane %v911_v18, %v917_v17 }
 0x3a5   : > { %v925_v20 = vrot.slane %v918_v19, %v917_v17 }
 0x3a7   : > { %931 = vst.msk [vmem:[%s369_s13] sm:$0x3] %vm929_vm1, %v925_v20 }
 0x3a8   : > { %1206 = shalt.err (!%p1203_p2)
}
 0x3a9   : > { %s1207_s30 = scalar_lea.hbm %s1508_s22, 32  ;;  %s1211_s13 = scalar_lea.hbm %s1560_s10, 64 }
 0x3aa   : > { %p1208_p3 = scmp.ne.s32.totalorder %s1508_s22, %s1207_s30  ;;  %p1212_p8 = scmp.lt.u32.totalorder %s1508_s22, %s1560_s10 }
 0x3ab   : > { %p1213_p9 = scmp.lt.u32.totalorder %s1211_s13, %s1207_s30  ;;  %p1215_p11 = scmp.lt.u32.totalorder %s1207_s30, %s1508_s22 }
 0x3ac   : > { %p1209_p4 = pnand %p1208_p3, %p1363_p5 }
 0x3ad   : > { %p1214_p10 = por %p1213_p9, %p1212_p8 }
 0x3ae   : > { %p1210_p7 = pneg %p1209_p4 }
 0x3af   : > { %p1216_p12 = por %p1215_p11, %p1214_p10 }
 0x3b1   : > { %p1217_p13 = pnand %p1216_p12, %p1210_p7 }
 0x3b3   : > { %1220 = shalt.err (!%p1217_p13)
}
 0x3b4   : > { %1072 = dma.vmem_to_hbm [thread:$0]  (%p1363_p5), %s1510_s14, 32, %s1508_s22, %s933_s26  }
 0x3b5 PF: > { %p1084_p0 = scmp.ge.s32.totalorder %s1259_s18, 2  ;;  %s959_s27 = sand.u32 1, %s1247_s15  }
 0x3b6   : > { %s960_s9 = scalar_lea.sflag [#allocation4], %s959_s27 }
 0x3b7   : > { %p1079_p1 = pnand %p1084_p0, %p1367_p6 }
 0x3b9   : > { %1242 = dma.done.wait (!%p1079_p1), %s960_s9, 32  }
 0x3ba   : > { %1244 = vsyncadd (!%p1079_p1), %s960_s9, 4294967264  ;;  %p23_p2 = scmp.ge.s32.totalorder %s1350_s20, 4   ;;  %s1564_s15 = smov %s1251_s16 }
 0x3bb   : > { %s1565_s16 = smov %s1255_s17  ;;  %s1566_s17 = smov %s1361_s23 }
 0x3bc   : > { %s1567_s18 = smov %s1350_s20  ;;  %25 = sbr.rel (!%p23_p2) target bundleno = 7 (0x7), region = 100 }
 0x3c3   :  { %965 = vsyncpa [#allocation4], 1 }
 0x3c4   :  { %967 = vsyncpa [#allocation4 + $0x1], 1 }
 0x3c5   :  { %968 = vsyncpa [#allocation5], 1 }
 0x3c6   :  { %970 = vsyncpa [#allocation5 + $0x1], 1 }

</bundles_post_ra>
